<compile_context>
chip_gen: v5e
topology: v5e:2x2
jax: 0.10.0
libtpu: 0.0.40
codegen_flags: <defaults>
</compile_context>

<pallas_src>
import jax
import jax.numpy as jnp
from jax.experimental import pallas as pl
from jax.experimental.pallas import tpu as pltpu

# ---- model hyper-params (ResNet-50 stem) ----
CIN, COUT = 3, 64
KH = KW = 7
CONV_STRIDE, CONV_PAD = 2, 3
POOL_K, POOL_STRIDE, POOL_PAD = 3, 2, 1
NUM_CLASSES = 2
BN_EPS = 1e-5
KWC = KW * CIN                 # 21 lanes per (padded row, output col)
NA = (KH + 1) // 2             # 4 row-shifted slices per output row
KPAD = NA * 2 * KWC            # 168 = fused matmul K (rows 147..167 zero)


# ---------------- Pallas kernel ----------------

def _make_stem_fc_kernel(OH, OW, num_classes):
    """Fused conv(7x7,s2)+BN+ReLU+maxpool(3x3,s2)+Linear for one image.

    xcol_ref : [1, (OH+3)*OW, 42] bf16  (rows = hh*OW + ow, lanes = b*21+kw*3+c,
                                         padded input row = 2*hh + b)
    w_ref    : [168, 64] bf16   conv weight, BN scale folded, K zero-padded
    shift_ref: [1, 64]   f32    BN shift
    mask_ref : [M, 2]    f32    lane0: 0 where ow==0, lane1: 0 where oh==0
    w2_ref   : [C, M, 64] f32   fc weight scattered to conv-resolution layout,
                                zero except at (even oh, even ow)
    b_ref    : [1, C]    f32    fc bias
    out_ref  : [1, 1, C] f32    logits for this image
    """
    M = OH * OW

    def kernel(xcol_ref, w_ref, shift_ref, mask_ref, w2_ref, b_ref, out_ref):
        # 1. assemble the K=168 operand: 4 row-shifted 42-lane slices, one concat
        taps = [xcol_ref[0, pl.ds(a * OW, M), :] for a in range(NA)]
        xcat = jnp.concatenate(taps, axis=1)                      # [M, 168] bf16

        # 2. conv as ONE MXU matmul (f32 accumulation) + BN shift + ReLU
        y = jnp.dot(xcat, w_ref[...], preferred_element_type=jnp.float32)
        y = jnp.maximum(y + shift_ref[...], 0.0)                  # [M, 64] f32

        # 3. 3x3 stride-2 pad-1 maxpool, relayout-free.
        #    Post-ReLU values are >= 0 so zero-fill at the pad border is exact.
        #    Wrap-around garbage from the "+1" rolls only lands on odd rows /
        #    cols, which carry zero classifier weight.
        mask_w = mask_ref[:, 0:1]                                  # [M, 1]
        mask_h = mask_ref[:, 1:2]
        left = pltpu.roll(y, 1, 0) * mask_w                        # col ow-1
        right = pltpu.roll(y, M - 1, 0)                            # col ow+1
        wmax = jnp.maximum(jnp.maximum(y, left), right)
        up = pltpu.roll(wmax, OW, 0) * mask_h                      # row oh-1
        down = pltpu.roll(wmax, M - OW, 0)                         # row oh+1
        hmax = jnp.maximum(jnp.maximum(wmax, up), down)            # [M, 64] f32

        # 4. fused classifier: fc weights are zero except at (even oh, even ow),
        #    so this full-map reduce == Linear over the NCHW-flattened pooled map.
        cols = []
        for c in range(num_classes):
            prod = hmax * w2_ref[c]                                # [M, 64] f32
            s = jnp.sum(prod, axis=0, keepdims=True)               # [1, 64]
            cols.append(jnp.sum(s, axis=1, keepdims=True))         # [1, 1]
        out_ref[0] = jnp.concatenate(cols, axis=1) + b_ref[...]    # [1, C]

    return kernel


# ---------------- wrapper (plain-JAX glue) ----------------

def init_params(key, num_features):
    ks = jax.random.split(key, 7)
    conv_w = jax.random.normal(ks[0], (COUT, CIN, KH, KW), jnp.float32) * 0.05
    bn_gamma = 1.0 + 0.1 * jax.random.normal(ks[1], (COUT,), jnp.float32)
    bn_beta = 0.1 * jax.random.normal(ks[2], (COUT,), jnp.float32)
    bn_mean = 0.1 * jax.random.normal(ks[3], (COUT,), jnp.float32)
    bn_var = jnp.abs(jax.random.normal(ks[4], (COUT,), jnp.float32)) + 0.5
    fc_w = jax.random.normal(ks[5], (NUM_CLASSES, num_features), jnp.float32) * 0.02
    fc_b = 0.01 * jax.random.normal(ks[6], (NUM_CLASSES,), jnp.float32)
    return dict(conv_w=conv_w, bn_gamma=bn_gamma, bn_beta=bn_beta,
                bn_mean=bn_mean, bn_var=bn_var, fc_w=fc_w, fc_b=fc_b)


def custom_resnet_forward(x_nchw, params):
    N, cin, H, W = x_nchw.shape
    assert cin == CIN
    # TODO(synk): odd / non-multiple-of-4 spatial sizes (handled by PyTorch's
    # stem) would need ragged-tail handling in the im2col + pool masks.
    assert H % 4 == 0 and W % 4 == 0, "stem kernel assumes H, W multiples of 4"
    OH, OW = H // 2, W // 2          # conv output (7x7, s2, p3)
    PH, PW = OH // 2, OW // 2        # pool output (3x3, s2, p1)
    M = OH * OW
    HR = OH + KH // 2                # per row-parity padded-row count

    # --- width-only im2col, row-parity merged into lanes (bf16, no duplication)
    x = jnp.transpose(x_nchw, (0, 2, 3, 1))                       # NCHW -> NHWC
    xpad = jnp.pad(x, ((0, 0), (CONV_PAD,) * 2, (CONV_PAD,) * 2, (0, 0)))
    cols = [xpad[:, :, kw: kw + 2 * OW: 2, :] for kw in range(KW)]
    xr = jnp.stack(cols, axis=3).reshape(N, 2 * HR, OW, KWC)      # lanes kw*3+c
    xcol = (xr.reshape(N, HR, 2, OW, KWC)                         # row h = 2*hh + b
              .transpose(0, 1, 3, 2, 4)                           # [N, HR, OW, 2, 21]
              .reshape(N, HR * OW, 2 * KWC)                       # lanes b*21+kw*3+c
              .astype(jnp.bfloat16))
    # TODO(synk): this im2col is a memory-bound XLA op (~2x raw input bytes);
    # it could be fused into the kernel via a pl.ANY input + per-row DMA.

    # --- conv weight: fold BN scale, (kh, kw, cin)-major rows, zero-pad K to 168
    scale = params["bn_gamma"] / jnp.sqrt(params["bn_var"] + BN_EPS)
    shift = (params["bn_beta"] - params["bn_mean"] * scale).reshape(1, COUT)
    w = jnp.transpose(params["conv_w"], (2, 3, 1, 0)).reshape(KH, KWC, COUT) * scale
    w = jnp.concatenate([w, jnp.zeros((1, KWC, COUT), w.dtype)], axis=0)  # kh=7 pad
    wcat = w.reshape(KPAD, COUT).astype(jnp.bfloat16)   # row = (2a+b)*21 + kw*3 + c

    # --- pool-window boundary masks (grid-invariant; no in-kernel integer mod)
    ow_ok = (jnp.arange(OW) != 0).astype(jnp.float32)
    oh_ok = (jnp.arange(OH) != 0).astype(jnp.float32)
    mask_w = jnp.broadcast_to(ow_ok[None, :], (OH, OW)).reshape(M, 1)
    mask_h = jnp.broadcast_to(oh_ok[:, None], (OH, OW)).reshape(M, 1)
    masks = jnp.concatenate([mask_w, mask_h], axis=1)             # [M, 2] f32

    # --- fc weights: NCHW-flatten order scattered to the kernel's (oh, ow, cout)
    #     conv-resolution layout; zero at non-pooled (odd) positions.
    w2 = params["fc_w"].reshape(NUM_CLASSES, COUT, PH, PW).transpose(0, 2, 3, 1)
    w2full = jnp.zeros((NUM_CLASSES, OH, OW, COUT), jnp.float32)
    w2full = w2full.at[:, ::2, ::2, :].set(w2).reshape(NUM_CLASSES, M, COUT)
    bias = params["fc_b"].reshape(1, NUM_CLASSES).astype(jnp.float32)

    out = pl.pallas_call(
        _make_stem_fc_kernel(OH, OW, NUM_CLASSES),
        out_shape=jax.ShapeDtypeStruct((N, 1, NUM_CLASSES), jnp.float32),
        grid=(N,),
        in_specs=[
            pl.BlockSpec((1, HR * OW, 2 * KWC), lambda n: (n, 0, 0)),
            pl.BlockSpec((KPAD, COUT), lambda n: (0, 0)),                # resident
            pl.BlockSpec((1, COUT), lambda n: (0, 0)),                   # resident
            pl.BlockSpec((M, 2), lambda n: (0, 0)),                      # resident
            pl.BlockSpec((NUM_CLASSES, M, COUT), lambda n: (0, 0, 0)),   # resident
            pl.BlockSpec((1, NUM_CLASSES), lambda n: (0, 0)),            # resident
        ],
        out_specs=pl.BlockSpec((1, 1, NUM_CLASSES), lambda n: (n, 0, 0)),
        compiler_params=pltpu.CompilerParams(
            dimension_semantics=("parallel",),
            vmem_limit_bytes=64 * 1024 * 1024),
        cost_estimate=pl.CostEstimate(
            flops=2 * N * M * KPAD * COUT + 2 * N * NUM_CLASSES * M * COUT,
            transcendentals=0,
            bytes_accessed=(xcol.size * 2 + wcat.size * 2 + shift.size * 4
                            + masks.size * 4 + w2full.size * 4 + bias.size * 4
                            + N * NUM_CLASSES * 4)),
    )(xcol, wcat, shift, masks, w2full, bias)
    return out.reshape(N, NUM_CLASSES)


# ---------------- pure-JAX reference (f32) for the sanity check ----------------

def _reference_forward(x, params):
    y = jax.lax.conv_general_dilated(
        x, params["conv_w"], window_strides=(CONV_STRIDE, CONV_STRIDE),
        padding=((CONV_PAD, CONV_PAD), (CONV_PAD, CONV_PAD)),
        dimension_numbers=("NCHW", "OIHW", "NCHW"))
    scale = params["bn_gamma"] / jnp.sqrt(params["bn_var"] + BN_EPS)
    shift = params["bn_beta"] - params["bn_mean"] * scale
    y = y * scale[None, :, None, None] + shift[None, :, None, None]
    y = jnp.maximum(y, 0.0)
    y = jax.lax.reduce_window(
        y, -jnp.inf, jax.lax.max,
        window_dimensions=(1, 1, POOL_K, POOL_K),
        window_strides=(1, 1, POOL_STRIDE, POOL_STRIDE),
        padding=((0, 0), (0, 0), (POOL_PAD, POOL_PAD), (POOL_PAD, POOL_PAD)))
    flat = y.reshape(y.shape[0], -1)
    return flat @ params["fc_w"].T + params["fc_b"]


# TODO(synk): save_checkpoints / load_checkpoint / get_activation_maps and the
# 32x3x128x128 feature-size probe in _calculate_num_features are framework
# plumbing, not kernel compute; num_features is derived analytically here.

if __name__ == "__main__":
    key = jax.random.PRNGKey(0)
    kx, kp = jax.random.split(key)

    N, H, W = 2, 16, 16
    x = jax.random.normal(kx, (N, CIN, H, W), jnp.float32)

    # conv 16->8, pool 8->4 => num_features = 64*4*4
    num_features = COUT * (H // 4) * (W // 4)
    params = init_params(kp, num_features)

    fwd = jax.jit(custom_resnet_forward)
    out = jax.block_until_ready(fwd(x, params))

    assert out.shape == (N, NUM_CLASSES), out.shape
    assert bool(jnp.all(jnp.isfinite(out)))
    ref = _reference_forward(x, params)
    assert bool(jnp.allclose(out, ref, rtol=2e-2, atol=2e-2)), (out, ref)
    print("KERNEL_OK")
</pallas_src>

<mosaic_0001>
module attributes {stable_mosaic.version = 11 : i64} {
  func.func @kernel(%arg0: i32, %arg1: memref<1x88x42xbf16, #tpu.memory_space<vmem>>, %arg2: memref<168x64xbf16, #tpu.memory_space<vmem>>, %arg3: memref<1x64xf32, #tpu.memory_space<vmem>>, %arg4: memref<64x2xf32, #tpu.memory_space<vmem>>, %arg5: memref<2x64x64xf32, #tpu.memory_space<vmem>>, %arg6: memref<1x2xf32, #tpu.memory_space<vmem>>, %arg7: memref<1x1x2xf32, #tpu.memory_space<vmem>>) attributes {dimension_semantics = [#tpu.dimension_semantics<parallel>], iteration_bounds = array<i64: 2>, scalar_prefetch = 0 : i64, scratch_operands = 0 : i64, tpu.core_type = #tpu.core_type<tc>, window_params = [{transform_indices = @transform_0, window_bounds = array<i64: 1, 88, 42>}, {pipeline_mode = #tpu.pipeline_mode<synchronous>, transform_indices = @transform_1, window_bounds = array<i64: 168, 64>}, {pipeline_mode = #tpu.pipeline_mode<synchronous>, transform_indices = @transform_2, window_bounds = array<i64: 1, 64>}, {pipeline_mode = #tpu.pipeline_mode<synchronous>, transform_indices = @transform_3, window_bounds = array<i64: 64, 2>}, {pipeline_mode = #tpu.pipeline_mode<synchronous>, transform_indices = @transform_4, window_bounds = array<i64: 2, 64, 64>}, {pipeline_mode = #tpu.pipeline_mode<synchronous>, transform_indices = @transform_5, window_bounds = array<i64: 1, 2>}, {transform_indices = @transform_6, window_bounds = array<i64: 1, 1, 2>}]} {
    %c0 = arith.constant 0 : index
    %c0_0 = arith.constant 0 : index
    %c0_1 = arith.constant 0 : index
    %0 = vector.load %arg1[%c0, %c0_0, %c0_1] : memref<1x88x42xbf16, #tpu.memory_space<vmem>>, vector<1x64x42xbf16>
    %1 = vector.shape_cast %0 : vector<1x64x42xbf16> to vector<64x42xbf16>
    %c0_2 = arith.constant 0 : index
    %c8 = arith.constant 8 : index
    %c0_3 = arith.constant 0 : index
    %2 = vector.load %arg1[%c0_2, %c8, %c0_3] : memref<1x88x42xbf16, #tpu.memory_space<vmem>>, vector<1x64x42xbf16>
    %3 = vector.shape_cast %2 : vector<1x64x42xbf16> to vector<64x42xbf16>
    %c0_4 = arith.constant 0 : index
    %c16 = arith.constant 16 : index
    %c0_5 = arith.constant 0 : index
    %4 = vector.load %arg1[%c0_4, %c16, %c0_5] : memref<1x88x42xbf16, #tpu.memory_space<vmem>>, vector<1x64x42xbf16>
    %5 = vector.shape_cast %4 : vector<1x64x42xbf16> to vector<64x42xbf16>
    %c0_6 = arith.constant 0 : index
    %c24 = arith.constant 24 : index
    %c0_7 = arith.constant 0 : index
    %6 = vector.load %arg1[%c0_6, %c24, %c0_7] : memref<1x88x42xbf16, #tpu.memory_space<vmem>>, vector<1x64x42xbf16>
    %7 = vector.shape_cast %6 : vector<1x64x42xbf16> to vector<64x42xbf16>
    %8 = tpu.concatenate %1, %3, %5, %7 in 1 : vector<64x42xbf16>, vector<64x42xbf16>, vector<64x42xbf16>, vector<64x42xbf16> -> vector<64x168xbf16>
    %c0_8 = arith.constant 0 : index
    %c0_9 = arith.constant 0 : index
    %9 = vector.load %arg2[%c0_8, %c0_9] : memref<168x64xbf16, #tpu.memory_space<vmem>>, vector<168x64xbf16>
    %cst = arith.constant dense<0.000000e+00> : vector<64x64xf32>
    %10 = tpu.matmul %8, %9, %cst {dimension_numbers = #tpu.dot_dimension_numbers<[1], [0], [0], [1], [0, 0, 1, 1], [], []>} : vector<64x168xbf16>, vector<168x64xbf16>, vector<64x64xf32> -> vector<64x64xf32>
    %c0_10 = arith.constant 0 : index
    %c0_11 = arith.constant 0 : index
    %11 = vector.load %arg3[%c0_10, %c0_11] : memref<1x64xf32, #tpu.memory_space<vmem>>, vector<1x64xf32>
    %12 = vector.broadcast %11 : vector<1x64xf32> to vector<64x64xf32>
    %13 = arith.addf %10, %12 : vector<64x64xf32>
    %cst_12 = arith.constant 0.000000e+00 : f32
    %14 = vector.broadcast %cst_12 : f32 to vector<64x64xf32>
    %15 = arith.maximumf %13, %14 : vector<64x64xf32>
    %c0_13 = arith.constant 0 : index
    %c0_14 = arith.constant 0 : index
    %16 = vector.load %arg4[%c0_13, %c0_14] : memref<64x2xf32, #tpu.memory_space<vmem>>, vector<64x1xf32>
    %c0_15 = arith.constant 0 : index
    %c1 = arith.constant 1 : index
    %17 = vector.load %arg4[%c0_15, %c1] : memref<64x2xf32, #tpu.memory_space<vmem>>, vector<64x1xf32>
    %c1_i32 = arith.constant 1 : i32
    %18 = tpu.dynamic_rotate %15 by %c1_i32 dim 0 : vector<64x64xf32>, i32 -> vector<64x64xf32>
    %19 = vector.broadcast %16 : vector<64x1xf32> to vector<64x64xf32>
    %20 = arith.mulf %18, %19 : vector<64x64xf32>
    %c63_i32 = arith.constant 63 : i32
    %21 = tpu.dynamic_rotate %15 by %c63_i32 dim 0 : vector<64x64xf32>, i32 -> vector<64x64xf32>
    %22 = arith.maximumf %15, %20 : vector<64x64xf32>
    %23 = arith.maximumf %22, %21 : vector<64x64xf32>
    %c8_i32 = arith.constant 8 : i32
    %24 = tpu.dynamic_rotate %23 by %c8_i32 dim 0 : vector<64x64xf32>, i32 -> vector<64x64xf32>
    %25 = vector.broadcast %17 : vector<64x1xf32> to vector<64x64xf32>
    %26 = arith.mulf %24, %25 : vector<64x64xf32>
    %c56_i32 = arith.constant 56 : i32
    %27 = tpu.dynamic_rotate %23 by %c56_i32 dim 0 : vector<64x64xf32>, i32 -> vector<64x64xf32>
    %28 = arith.maximumf %23, %26 : vector<64x64xf32>
    %29 = arith.maximumf %28, %27 : vector<64x64xf32>
    %c0_16 = arith.constant 0 : index
    %c0_17 = arith.constant 0 : index
    %c0_18 = arith.constant 0 : index
    %30 = vector.load %arg5[%c0_16, %c0_17, %c0_18] : memref<2x64x64xf32, #tpu.memory_space<vmem>>, vector<1x64x64xf32>
    %31 = vector.shape_cast %30 : vector<1x64x64xf32> to vector<64x64xf32>
    %32 = arith.mulf %29, %31 : vector<64x64xf32>
    %cst_19 = arith.constant dense<0.000000e+00> : vector<64xf32>
    %33 = vector.multi_reduction <add>, %32, %cst_19 [0] : vector<64x64xf32> to vector<64xf32>
    %34 = vector.shape_cast %33 : vector<64xf32> to vector<1x64xf32>
    %cst_20 = arith.constant dense<0.000000e+00> : vector<1xf32>
    %35 = vector.multi_reduction <add>, %34, %cst_20 [1] : vector<1x64xf32> to vector<1xf32>
    %36 = vector.shape_cast %35 : vector<1xf32> to vector<1x1xf32>
    %c1_21 = arith.constant 1 : index
    %c0_22 = arith.constant 0 : index
    %c0_23 = arith.constant 0 : index
    %37 = vector.load %arg5[%c1_21, %c0_22, %c0_23] : memref<2x64x64xf32, #tpu.memory_space<vmem>>, vector<1x64x64xf32>
    %38 = vector.shape_cast %37 : vector<1x64x64xf32> to vector<64x64xf32>
    %39 = arith.mulf %29, %38 : vector<64x64xf32>
    %cst_24 = arith.constant dense<0.000000e+00> : vector<64xf32>
    %40 = vector.multi_reduction <add>, %39, %cst_24 [0] : vector<64x64xf32> to vector<64xf32>
    %41 = vector.shape_cast %40 : vector<64xf32> to vector<1x64xf32>
    %cst_25 = arith.constant dense<0.000000e+00> : vector<1xf32>
    %42 = vector.multi_reduction <add>, %41, %cst_25 [1] : vector<1x64xf32> to vector<1xf32>
    %43 = vector.shape_cast %42 : vector<1xf32> to vector<1x1xf32>
    %44 = tpu.concatenate %36, %43 in 1 : vector<1x1xf32>, vector<1x1xf32> -> vector<1x2xf32>
    %c0_26 = arith.constant 0 : index
    %c0_27 = arith.constant 0 : index
    %45 = vector.load %arg6[%c0_26, %c0_27] : memref<1x2xf32, #tpu.memory_space<vmem>>, vector<1x2xf32>
    %46 = arith.addf %44, %45 : vector<1x2xf32>
    %c0_28 = arith.constant 0 : index
    %c0_29 = arith.constant 0 : index
    %c0_30 = arith.constant 0 : index
    %47 = vector.load %arg7[%c0_28, %c0_29, %c0_30] : memref<1x1x2xf32, #tpu.memory_space<vmem>>, vector<1x1x2xf32>
    %48 = vector.shape_cast %47 : vector<1x1x2xf32> to vector<1x2xf32>
    %49 = vector.shape_cast %46 : vector<1x2xf32> to vector<1x1x2xf32>
    tpu.vector_store %arg7[%c0_28, %c0_29, %c0_30], %49 {strides = array<i32>} : memref<1x1x2xf32, #tpu.memory_space<vmem>>, vector<1x1x2xf32>,
    return
  }
  func.func @transform_0(%arg0: i32) -> (i32, i32, i32) {
    %c0_i32 = arith.constant 0 : i32
    %c0_i32_0 = arith.constant 0 : i32
    %c0_i32_1 = arith.constant 0 : i32
    return %arg0, %c0_i32, %c0_i32_0 : i32, i32, i32
  }
  func.func @transform_1(%arg0: i32) -> (i32, i32) {
    %c0_i32 = arith.constant 0 : i32
    %c0_i32_0 = arith.constant 0 : i32
    %c0_i32_1 = arith.constant 0 : i32
    return %c0_i32, %c0_i32_0 : i32, i32
  }
  func.func @transform_2(%arg0: i32) -> (i32, i32) {
    %c0_i32 = arith.constant 0 : i32
    %c0_i32_0 = arith.constant 0 : i32
    %c0_i32_1 = arith.constant 0 : i32
    return %c0_i32, %c0_i32_0 : i32, i32
  }
  func.func @transform_3(%arg0: i32) -> (i32, i32) {
    %c0_i32 = arith.constant 0 : i32
    %c0_i32_0 = arith.constant 0 : i32
    %c0_i32_1 = arith.constant 0 : i32
    return %c0_i32, %c0_i32_0 : i32, i32
  }
  func.func @transform_4(%arg0: i32) -> (i32, i32, i32) {
    %c0_i32 = arith.constant 0 : i32
    %c0_i32_0 = arith.constant 0 : i32
    %c0_i32_1 = arith.constant 0 : i32
    %c0_i32_2 = arith.constant 0 : i32
    return %c0_i32, %c0_i32_0, %c0_i32_1 : i32, i32, i32
  }
  func.func @transform_5(%arg0: i32) -> (i32, i32) {
    %c0_i32 = arith.constant 0 : i32
    %c0_i32_0 = arith.constant 0 : i32
    %c0_i32_1 = arith.constant 0 : i32
    return %c0_i32, %c0_i32_0 : i32, i32
  }
  func.func @transform_6(%arg0: i32) -> (i32, i32, i32) {
    %c0_i32 = arith.constant 0 : i32
    %c0_i32_0 = arith.constant 0 : i32
    %c0_i32_1 = arith.constant 0 : i32
    return %arg0, %c0_i32, %c0_i32_0 : i32, i32, i32
  }
}

</mosaic_0001>

<bundles_post_ra>
// kernel: custom_resnet_forward.1
= control target key start
LH: loop header
LB: loop body
LE: loop exit
PB: predicated region body
PF: predicated region fallthrough
CT: control target
= control target key end

     0   :  { %11 = vsyncpa [#allocation3], 0  ;;  %s1487_s0 = inlined_call_operand.vmem [shape: bf16[2,88,42], index: 0, kind: input, shape index: {}]   ;;  %s1488_s1 = inlined_call_operand.vmem [shape: bf16[168,64], index: 1, kind: input, shape index: {}]   ;;  %s1489_s2 = inlined_call_operand.vmem [shape: f32[1,64], index: 2, kind: input, shape index: {}]   ;;  %s1490_s3 = inlined_call_operand.vmem [shape: f32[64,2], index: 3, kind: input, shape index: {}]   ;;  %s1491_s4 = inlined_call_operand.vmem [shape: f32[2,64,64], index: 4, kind: input, shape index: {}]   ;;  %s1492_s5 = inlined_call_operand.vmem [shape: f32[1,2], index: 5, kind: input, shape index: {}]   ;;  %s1493_s6 = inlined_call_operand.hbm [shape: f32[2,1,2], index: 6, kind: output, shape index: {}]  }
   0x1   :  { %13 = vsyncpa [#allocation3 + $0x1], 0  ;;  %s1136_s21 = smov 0   ;;  %s1138_s22 = smov 0  }
   0x2   :  { %s1140_s23 = smov 0   ;;  %s1142_s24 = smov 0  }
   0x3 LB: > { %s1157_s25 = sadd.s32 4294967295, %s1094_s24   ;;  %s839_s26 = sadd.s32 4294967294, %s1094_s24   ;;  %s1094_s24 = sphi %s1142_s24, %s1499_s24   ;;  %s1090_s23 = sphi %s1140_s23, %s1498_s23   ;;  %s1086_s22 = sphi %s1138_s22, %s1497_s22   ;;  %s1082_s21 = sphi %s1136_s21, %s1496_s21  }
   0x4   : > { %s1161_s27 = sadd.s32 1, %s1094_s24   ;;  %s157_s28 = sadd.s32 1, %s1090_s23 }
   0x5   : > { %s154_s29 = ssub.s32 %s1094_s24, %s1161_s27  ;;  %p167_p0 = scmp.ne.s32.totalorder %s1090_s23, %s1086_s22 }
   0x6   : > { %p155_p1 = scmp.eq.s32.totalorder %s154_s29, 0  ;;  %p168_p2 = scmp.eq.s32.totalorder %s1157_s25, 1 }
   0x7   : > { %p173_p3 = scmp.ne.s32.totalorder %s1086_s22, %s1082_s21  ;;  %p174_p4 = scmp.eq.s32.totalorder %s839_s26, 1 }
   0x8   : > { %s1172_s30 = scalar_select %p155_p1, %s1090_s23, %s157_s28  }
   0x9   : > { %p1174_p5 = por %p168_p2, %p167_p0  ;;  %p1178_p6 = por %p174_p4, %p173_p3 }
   0xa   : > { %p842_p7 = scmp.ge.s32.totalorder %s1094_s24, 1  ;;  %p215_p8 = scmp.lt.s32.totalorder %s1094_s24, 3 }
   0xc   : > { %p216_p9 = pnand %p842_p7, %p215_p8 }
   0xd   : > { %p244_p10 = scmp.lt.s32.totalorder (!%p216_p9), %s1157_s25, 1  ;;  %s1096_s28 = smov (!%p216_p9), 84  }
   0xe   : > { %219 = sbr.rel (%p216_p9) target bundleno = 484 (0x1e4), region = 44  ;;  %s1097_s10 = smov (!%p216_p9), 126  }
   0xf   : > { %s1098_s17 = smov (!%p216_p9), 42   ;;  %s242_s15 = sand.u32 (!%p216_p9), 1, %s1086_s22  }
  0x10   : > { %s780_s18 = scalar_lea.hbm (!%p216_p9), %s1493_s6, %s1157_s25  ;;  %s243_s29 = scalar_lea.vmem (!%p216_p9), [#allocation2], %s242_s15 }
  0x11   : > { %s782_s9 = sshll.u32 (!%p216_p9), %s243_s29, 4  ;;  %s1052_s13 = scalar_lea.hbm (!%p216_p9), %s1493_s6, 2  ;;  %s783_s9 = int_to_ptr.vmem [resolvable:$true] %s782_s9 }
  0x13   : > { %v905_v0 = vld [vmem:[%s1488_s1 + $0x38] sm:$0xff]  ;;  %s245_s11 = scalar_select %p244_p10, %s1157_s25, 1  ;;  %v372_v1 = vld [vmem:[%s1488_s1 + $0x50] sm:$0xf]  ;;  %vm449_vm0 = vcmask 1043456   ;;  %v903_v7 = vld [vmem:[%s1488_s1 + $0x28] sm:$0xff] }
  0x14   : > { %965 = vmatpush.bf16.msra.mxu2 %v905_v0  ;;  %v904_v2 = vld [vmem:[%s1488_s1 + $0x30] sm:$0xff]  ;;  %453 = vmatpush.bf16.msra.mxu0 %v905_v0  ;;  %v418_v3 = vunpack.c.l.b16 %v372_v1  ;;  %v907_v10 = vld [vmem:[%s1488_s1 + $0x48] sm:$0xff]  ;;  %v902_v11 = vld [vmem:[%s1488_s1 + $0x20] sm:$0xff]  ;;  %v1099_v23 = vmov 0   ;;  %vm440_vm1 = vcmask 326656   ;;  %v1100_v30 = vmov 1  }
  0x15   : > { %s978_s16 = smul.u32 44, %s245_s11  ;;  %v906_v13 = vld [vmem:[%s1488_s1 + $0x40] sm:$0xff]  ;;  %v901_v15 = vld [vmem:[%s1488_s1 + $0x18] sm:$0xff]  ;;  %v900_v20 = vld [vmem:[%s1488_s1 + $0x10] sm:$0xff]  ;;  %1024 = vset.pattern.permute.xlu1 %v1099_v23  ;;  %1023 = vset.pattern.permute.xlu0 %v1099_v23  ;;  %vm317_vm2 = vcmask 343040   ;;  %vm330_vm3 = vcmask 687104  }
  0x16   : > { %v429_v4 = vpack.c.b16 %v418_v3, %v418_v3  ;;  %v899_v21 = vld [vmem:[%s1488_s1 + $0x8] sm:$0xff]  ;;  %v898_v22 = vld [vmem:[%s1488_s1] sm:$0xff]  ;;  %v1250_v24 = vld [vmem:[%s1490_s3 + $0x38] sm:$0xff]  ;;  %1025 = vset.pattern.permute.xlu2 %v1099_v23  ;;  %vm339_vm4 = vcmask 1031168   ;;  %vm699_vm7 = vcmask 523264   ;;  %vm765_vm8 = vcmask 7168  }
  0x17   : > { %s1198_s19 = scalar_lea.vmem %s1487_s0, %s978_s16  ;;  %v521_v25 = vld [vmem:[%s1490_s3 + $0x10] sm:$0xff]  ;;  %v520_v26 = vld [vmem:[%s1490_s3 + $0x8] sm:$0xff]  ;;  %v519_v31 = vld [vmem:[%s1490_s3] sm:$0xff]  ;;  %vm769_vm9 = vcmask 8192   ;;  %s772_s11 = scalar_lea.sflag [#allocation3], %s242_s15 }
  0x18   : > { %v1201_v5 = vld [vmem:[%s1198_s19 + $0x18] sm:$0xff]   ;;  %966 = vmatpush.bf16.msra.mxu2 %v904_v2  ;;  %v451_v8 = vsel %vm449_vm0, %v429_v4, 0  ;;  %454 = vmatpush.bf16.msra.mxu0 %v904_v2  ;;  %v1210_v9 = vld [vmem:[%s1198_s19 + $0x8] sm:$0xff]   ;;  %v931_v17 = vld [vmem:[%s1198_s19 + $0x20] sm:$0xff]  }
  0x19   : > { %v957_v6 = vld [vmem:[%s1198_s19 + $0x14] sm:$0xff]   ;;  %302 = vrot.lane.b32.xlu1 %v1201_v5, %s1096_s28  ;;  %973 = vmatpush.bf16.msra.mxu3 %v451_v8  ;;  %v977_v12 = vld [vmem:[%s1198_s19 + $0x1c] sm:$0xff]   ;;  %v954_v14 = vld [vmem:[%s1198_s19 + $0x4] sm:$0xff]  }
  0x1a   : > { %311 = vrot.lane.b32.xlu0 %v957_v6, %s1097_s10  ;;  %298 = vrot.lane.b32.xlu2 %v1210_v9, %s1096_s28  ;;  %v956_v16 = vld [vmem:[%s1198_s19 + $0xc] sm:$0xff]   ;;  %v959_v18 = vld [vmem:[%s1198_s19 + $0x24] sm:$0xff] }
  0x1b   : > { %487 = vmatpush.bf16.msra.mxu1 %v451_v8  ;;  %v929_v19 = vld [vmem:[%s1198_s19 + $0x10] sm:$0xff]   ;;  %v522_v32 = vld [vmem:[%s1490_s3 + $0x18] sm:$0xff]  ;;  %v909_v37 = vld [vmem:[%s1198_s19] sm:$0xff]   ;;  %s784_s19 = sshll.u32 %s780_s18, 4  ;;  %s785_s19 = int_to_ptr.hbm [resolvable:$true] %s784_s19 }
  0x1c   : > { %967 = vmatpush.bf16.msra.mxu2 %v903_v7  ;;  %455 = vmatpush.bf16.msra.mxu0 %v903_v7  ;;  %v523_v39 = vld [vmem:[%s1490_s3 + $0x20] sm:$0xff]  ;;  %v525_v45 = vld [vmem:[%s1490_s3 + $0x30] sm:$0xff]  ;;  %v524_v49 = vld [vmem:[%s1490_s3 + $0x28] sm:$0xff] }
  0x1d   : > { %974 = vmatpush.bf16.msra.mxu3 %v907_v10 }
  0x1f   : > { %488 = vmatpush.bf16.msra.mxu1 %v907_v10 }
  0x20   : > { %968 = vmatpush.bf16.msra.mxu2 %v902_v11  ;;  %456 = vmatpush.bf16.msra.mxu0 %v902_v11 }
  0x21   : > { %313 = vrot.lane.b32.xlu1 %v977_v12, %s1097_s10  ;;  %975 = vmatpush.bf16.msra.mxu3 %v906_v13 }
  0x22   : > { %291 = vrot.lane.b32.xlu0 %v957_v6, %s1098_s17  ;;  %287 = vrot.lane.b32.xlu2 %v954_v14, %s1098_s17  ;;  %v1031_v6 = vld [vmem:[%s1489_s2] ss:$0 sm:$0xff] }
  0x23   : > { %489 = vmatpush.bf16.msra.mxu1 %v906_v13 }
  0x24   : > { %969 = vmatpush.bf16.msra.mxu2 %v901_v15  ;;  %457 = vmatpush.bf16.msra.mxu0 %v901_v15 }
  0x28   : > { %970 = vmatpush.bf16.msra.mxu2 %v900_v20  ;;  %458 = vmatpush.bf16.msra.mxu0 %v900_v20 }
  0x29   : > { %293 = vrot.lane.b32.xlu1 %v977_v12, %s1098_s17 }
  0x2a   : > { %309 = vrot.lane.b32.xlu0 %v956_v16, %s1097_s10  ;;  %304 = vrot.lane.b32.xlu2 %v931_v17, %s1096_s28 }
  0x2c   : > { %971 = vmatpush.bf16.msra.mxu2 %v899_v21  ;;  %459 = vmatpush.bf16.msra.mxu0 %v899_v21 }
  0x30   : > { %972 = vmatpush.bf16.msra.mxu2 %v898_v22  ;;  %460 = vmatpush.bf16.msra.mxu0 %v898_v22 }
  0x31   : > { %289 = vrot.lane.b32.xlu1 %v956_v16, %s1098_s17  ;;  %v535_v16 = vlaneseq }
  0x32   : > { %315 = vrot.lane.b32.xlu0 %v959_v18, %s1097_s10  ;;  %300 = vrot.lane.b32.xlu2 %v929_v19, %s1096_s28  ;;  %s1046_s28 = sshra.s32 %s785_s19, 4  ;;  %s1047_s28 = int_to_ptr.hbm [resolvable:$true] %s1046_s28 }
  0x33   : > { %s1048_s25 = scalar_lea.hbm %s1047_s28, 1  ;;  %p1053_p0 = scmp.lt.s32.totalorder %s1047_s28, %s1493_s6 }
  0x34   : > { %p1049_p11 = scmp.ne.s32.totalorder %s1047_s28, %s1048_s25  ;;  %p1054_p1 = scmp.lt.s32.totalorder %s1052_s13, %s1048_s25 }
  0x36   : > { %p1050_p12 = pnand %p1049_p11, %p1174_p5  ;;  %p1055_p2 = por %p1054_p1, %p1053_p0 }
  0x38   : > { %p1051_p13 = pneg %p1050_p12 }
  0x39   : > { %583 = vperm.xlu1 %1024, %v1250_v24  }
  0x3a   : > { %553 = vperm.xlu2 %1025, %v520_v26   ;;  %548 = vperm.xlu0 %1023, %v519_v31   ;;  %p1056_p3 = pnand %p1055_p2, %p1051_p13 }
  0x41   : > { %558 = vperm.xlu1 %1024, %v521_v25  }
  0x42   : > { %563 = vperm.xlu2 %1025, %v522_v32   ;;  %1026 = vset.pattern.permute.xlu0 %v1100_v30 }
  0x43   : > { %628 = vperm.xlu0 %1026, %v519_v31  }
  0x49   : > { %1027 = vset.pattern.permute.xlu1 %v1100_v30 }
  0x4a   : > { %632 = vperm.xlu1 %1027, %v520_v26   ;;  %568 = vperm.xlu2 %1025, %v523_v39  }
  0x4b   : > { %640 = vperm.xlu0 %1026, %v522_v32  }
  0x52   : > { %636 = vperm.xlu1 %1027, %v521_v25   ;;  %573 = vperm.xlu2 %1025, %v524_v49  }
  0x53   : > { %648 = vperm.xlu0 %1026, %v524_v49  }
  0x5a   : > { %1028 = vset.pattern.permute.xlu1 %v1099_v23  ;;  %1029 = vset.pattern.permute.xlu2 %v1100_v30 }
  0x5b   : > { %578 = vperm.xlu1 %1028, %v525_v45   ;;  %644 = vperm.xlu2 %1029, %v523_v39  }
  0x63   : > { %1030 = vset.pattern.permute.xlu1 %v1100_v30  ;;  %656 = vperm.xlu2 %1029, %v1250_v24  }
  0x64   : > { %652 = vperm.xlu1 %1030, %v525_v45  }
  0x74   : > { %v299_v27 = vpop.permute.xlu2 %298 }
  0x7c   : > { %v288_v34 = vpop.permute.xlu2 %287 }
  0x7d   : > { %v320_v41 = vsel %vm317_vm2, %v909_v37, %v288_v34 }
  0x7e   : > { %v332_v44 = vsel %vm330_vm3, %v320_v41, %v299_v27  ;;  %v1307_v27 = vshrl.u32 %v535_v16, 7 }
  0x80   : > { %vm537_vm5 = vcmp.lt.s32.totalorder %v1307_v27, 1  ;;  %vm602_vm6 = vcmp.lt.s32.totalorder %v1307_v27, 7 }
  0x84   : > { %v305_v46 = vpop.permute.xlu2 %304 }
  0x8b   : > { %v303_v28 = vpop.permute.xlu1 %302 }
  0x8c   : > { %v312_v29 = vpop.permute.xlu0 %311  ;;  %v301_v55 = vpop.permute.xlu2 %300 }
  0x8d   : > { %885 = vmatmul.msk.bf16.vlgmr.msra.gmra.mxu3 %vm440_vm1, %v312_v29 }
  0x93   : > { %v314_v33 = vpop.permute.xlu1 %313 }
  0x94   : > { %v292_v35 = vpop.permute.xlu0 %291  ;;  %v554_v61 = vpop.permute.xlu2 %553 }
  0x95   : > { %v326_v36 = vsel %vm317_vm2, %v929_v19, %v292_v35 }
  0x96   : > { %v336_v38 = vsel %vm330_vm3, %v326_v36, %v303_v28 }
  0x97   : > { %v347_v40 = vsel %vm339_vm4, %v336_v38, %v314_v33 }
  0x98   : > { %471 = vmatmul.bf16.vlgmr.msra.gmra.mxu2 %v347_v40 }
  0x9b   : > { %v294_v42 = vpop.permute.xlu1 %293 }
  0x9c   : > { %v310_v43 = vpop.permute.xlu0 %309  ;;  %v329_v48 = vsel %vm317_vm2, %v1201_v5, %v294_v42  ;;  %v1296_v5 = vpop.permute.xlu2 %563 }
  0x9d   : > { %884 = vmatmul.msk.bf16.vlgmr.msra.gmra.mxu1 %vm440_vm1, %v310_v43  ;;  %886 = vmatmul.msk.bf16.gmra.mxu3 %vm440_vm1, %v314_v33  ;;  %v341_v47 = vsel %vm339_vm4, %v332_v44, %v310_v43  ;;  %v338_v50 = vsel %vm330_vm3, %v329_v48, %v305_v46 }
  0x9e   : > { %461 = vmatmul.bf16.vlgmr.msra.gmra.mxu0 %v341_v47 }
  0xa3   : > { %v290_v51 = vpop.permute.xlu1 %289 }
  0xa4   : > { %v316_v52 = vpop.permute.xlu0 %315  ;;  %v323_v54 = vsel %vm317_vm2, %v1210_v9, %v290_v51  ;;  %v569_v23 = vpop.permute.xlu2 %568 }
  0xa5   : > { %v350_v53 = vsel %vm339_vm4, %v338_v50, %v316_v52  ;;  %v334_v56 = vsel %vm330_vm3, %v323_v54, %v301_v55 }
  0xa6   : > { %v344_v57 = vsel %vm339_vm4, %v334_v56, %v312_v29 }
  0xa8   : > { %476 = vmatmul.bf16.gmra.mxu2 %v350_v53 }
  0xab   : > { %v1294_v59 = vpop.permute.xlu1 %583 }
  0xac   : > { %v1301_v10 = vpop.permute.xlu0 %548  ;;  %v574_v51 = vpop.permute.xlu2 %573 }
  0xad   : > { %887 = vmatmul.msk.bf16.gmra.mxu3 %vm440_vm1, %v316_v52 }
  0xae   : > { %466 = vmatmul.bf16.gmra.mxu0 %v344_v57 }
  0xb3   : > { %v559_v0 = vpop.permute.xlu1 %558 }
  0xb5   : > { %v1316_v33 = vpop.permute.xlu0 %628 }
  0xbc   : > { %v1303_v11 = vpop.permute.xlu1 %632 }
  0xc4   : > { %v1319_v37 = vpop.permute.xlu1 %636 }
 0x110   : > { %v496_v58 = vpop.f32.mrf.mxu3 }
 0x118   : > { %v498_v60 = vpop.f32.mrf.mxu3 }
 0x11a   : > { %v491_v1 = vpop.f32.mrf.mxu1 }
 0x11b   : > { %v462_v62 = vpop.f32.mrf.mxu0  ;;  %v472_v63 = vpop.f32.mrf.mxu2 }
 0x11c   : > { %v463_v9 = vadd.f32 %v1031_v6, %v462_v62  ;;  %v473_v20 = vadd.f32 %v1031_v6, %v472_v63 }
 0x11e   : > { %v492_v19 = vadd.f32 %v491_v1, %v463_v9 }
 0x120   : > { %v501_v2 = vpop.f32.mrf.mxu3  ;;  %v1311_v30 = vmax.f32 %v492_v19, 0.0 }
 0x121   : > { %v502_v26 = vadd.f32 %v501_v2, %v473_v20 }
 0x122   : > { %v493_v12 = vpop.f32.mrf.mxu1  ;;  %v527_v41 = vrot.slane %v1311_v30, 7 }
 0x123   : > { %v464_v3 = vpop.f32.mrf.mxu0  ;;  %v474_v4 = vpop.f32.mrf.mxu2  ;;  %v515_v36 = vmax.f32 %v502_v26, 0.0 }
 0x124   : > { %v465_v7 = vadd.f32 %v1031_v6, %v464_v3  ;;  %v475_v17 = vadd.f32 %v1031_v6, %v474_v4  ;;  %v645_v26 = vpop.permute.xlu2 %644 }
 0x125   : > { %v531_v47 = vrot.slane %v515_v36, 7  ;;  %v598_v63 = vrot.slane %v515_v36, 1 }
 0x126   : > { %v494_v13 = vadd.f32 %v493_v12, %v465_v7 }
 0x128   : > { %v503_v8 = vpop.f32.mrf.mxu3  ;;  %v1305_v24 = vmax.f32 %v494_v13, 0.0 }
 0x129   : > { %v504_v21 = vadd.f32 %v503_v8, %v475_v17 }
 0x12a   : > { %v528_v32 = vrot.slane %v1305_v24, 7  ;;  %v595_v1 = vrot.slane %v1305_v24, 1 }
 0x12b   : > { %v467_v14 = vpop.f32.mrf.mxu0  ;;  %v477_v15 = vpop.f32.mrf.mxu2  ;;  %v1313_v31 = vmax.f32 %v504_v21, 0.0 }
 0x12c   : > { %v468_v18 = vadd.f32 %v1031_v6, %v467_v14  ;;  %v478_v25 = vadd.f32 %v1031_v6, %v477_v15  ;;  %v544_v44 = vsel %vm537_vm5, %v527_v41, %v528_v32  ;;  %v579_v14 = vpop.permute.xlu1 %578 }
 0x12d   : > { %v532_v42 = vrot.slane %v1313_v31, 7  ;;  %v587_v53 = vmul.f32 %v554_v61, %v544_v44  ;;  %v599_v3 = vrot.slane %v1313_v31, 1 }
 0x12e   : > { %v497_v22 = vadd.f32 %v496_v58, %v468_v18 }
 0x12f   : > { %v540_v54 = vsel %vm537_vm5, %v531_v47, %v532_v42  ;;  %v612_v9 = vmax.f32 %v1305_v24, %v587_v53 }
 0x130   : > { %v1309_v28 = vmax.f32 %v497_v22, 0.0  ;;  %v506_v29 = vpop.f32.mrf.mxu3 }
 0x131   : > { %v507_v34 = vadd.f32 %v506_v29, %v478_v25  ;;  %v594_v29 = vrot.slane %v1311_v30, 1 }
 0x132   : > { %v529_v38 = vrot.slane %v1309_v28, 7  ;;  %v596_v55 = vrot.slane %v1309_v28, 1 }
 0x133   : > { %v469_v35 = vpop.f32.mrf.mxu0  ;;  %v479_v40 = vpop.f32.mrf.mxu2  ;;  %v1326_v45 = vmax.f32 %v507_v34, 0.0 }
 0x134   : > { %v470_v39 = vadd.f32 %v1031_v6, %v469_v35  ;;  %v480_v46 = vadd.f32 %v1031_v6, %v479_v40  ;;  %v543_v49 = vsel %vm537_vm5, %v528_v32, %v529_v38  ;;  %v641_v6 = vpop.permute.xlu0 %640  ;;  %v608_v12 = vsel %vm602_vm6, %v595_v1, %v596_v55 }
 0x135   : > { %v533_v57 = vrot.slane %v1326_v45, 7  ;;  %v600_v13 = vrot.slane %v1326_v45, 1  ;;  %v620_v22 = vmax.f32 %v612_v9, %v608_v12  ;;  %v605_v35 = vsel %vm602_vm6, %v598_v63, %v599_v3 }
 0x136   : > { %v499_v43 = vadd.f32 %v498_v60, %v470_v39  ;;  %v588_v60 = vmul.f32 %v559_v0, %v543_v49  ;;  %v591_v0 = vmul.f32 %v574_v51, %v540_v54 }
 0x137   : > { %v539_v15 = vsel %vm537_vm5, %v532_v42, %v533_v57  ;;  %v604_v40 = vsel %vm602_vm6, %v599_v3, %v600_v13  ;;  %v889_v3 = vld [vmem:[%s1491_s4 + $0x48] sm:$0xff] }
 0x138   : > { %v514_v48 = vmax.f32 %v499_v43, 0.0  ;;  %v508_v50 = vpop.f32.mrf.mxu3  ;;  %v592_v34 = vmul.f32 %v579_v14, %v539_v15  ;;  %v609_v43 = vsel %vm602_vm6, %v594_v29, %v595_v1 }
 0x139   : > { %v509_v52 = vadd.f32 %v508_v50, %v480_v46 }
 0x13a   : > { %v530_v56 = vrot.slane %v514_v48, 7  ;;  %v597_v58 = vrot.slane %v514_v48, 1  ;;  %v617_v49 = vmax.f32 %v1326_v45, %v592_v34  ;;  %v890_v45 = vld [vmem:[%s1491_s4 + $0x50] sm:$0xff]  ;;  %v893_v34 = vld [vmem:[%s1491_s4 + $0x68] sm:$0xff] }
 0x13b   : > { %v518_v62 = vmax.f32 %v509_v52, 0.0  ;;  %v653_v52 = vpop.permute.xlu1 %652 }
 0x13c   : > { %v541_v2 = vsel %vm537_vm5, %v530_v56, %v531_v47  ;;  %v542_v61 = vsel %vm537_vm5, %v529_v38, %v530_v56  ;;  %v607_v17 = vsel %vm602_vm6, %v596_v55, %v597_v58 }
 0x13d   : > { %v589_v4 = vmul.f32 %v1296_v5, %v542_v61  ;;  %v590_v7 = vmul.f32 %v569_v23, %v541_v2  ;;  %v534_v8 = vrot.slane %v518_v62, 7  ;;  %v613_v5 = vmax.f32 %v1309_v28, %v588_v60  ;;  %v657_v60 = vpop.permute.xlu2 %656  ;;  %v684_v2 = vld [vmem:[%s1491_s4 + $0x8] sm:$0xff]  ;;  %v888_v61 = vld [vmem:[%s1491_s4 + $0x40] sm:$0xff] }
 0x13e   : > { %v601_v21 = vrot.slane %v518_v62, 1  ;;  %v606_v23 = vsel %vm602_vm6, %v597_v58, %v598_v63 }
 0x13f   : > { %v614_v16 = vmax.f32 %v514_v48, %v589_v4  ;;  %v615_v18 = vmax.f32 %v515_v36, %v590_v7  ;;  %v538_v19 = vsel %vm537_vm5, %v533_v57, %v534_v8  ;;  %v545_v20 = vsel %vm537_vm5, %v534_v8, %v527_v41  ;;  %v685_v57 = vld [vmem:[%s1491_s4 + $0x10] sm:$0xff]  ;;  %v686_v4 = vld [vmem:[%s1491_s4 + $0x18] sm:$0xff] }
 0x140   : > { %v586_v24 = vmul.f32 %v1301_v10, %v545_v20  ;;  %v593_v25 = vmul.f32 %v1294_v59, %v538_v19  ;;  %v621_v28 = vmax.f32 %v613_v5, %v607_v17  ;;  %v610_v39 = vsel %vm602_vm6, %v601_v21, %v594_v29  ;;  %v687_v20 = vld [vmem:[%s1491_s4 + $0x20] sm:$0xff] }
 0x141   : > { %v622_v32 = vmax.f32 %v614_v16, %v606_v23  ;;  %v623_v38 = vmax.f32 %v615_v18, %v605_v35  ;;  %v616_v59 = vmax.f32 %v1313_v31, %v591_v0  ;;  %v661_v41 = vmul.f32 %v1319_v37, %v620_v22 }
 0x142   : > { %v618_v36 = vmax.f32 %v518_v62, %v593_v25  ;;  %v611_v10 = vmax.f32 %v1311_v30, %v586_v24  ;;  %v662_v44 = vmul.f32 %v641_v6, %v621_v28  ;;  %v603_v46 = vsel %vm602_vm6, %v600_v13, %v601_v21  ;;  %v649_v30 = vpop.permute.xlu0 %648  ;;  %v891_v6 = vld [vmem:[%s1491_s4 + $0x58] sm:$0xff]  ;;  %v892_v21 = vld [vmem:[%s1491_s4 + $0x60] sm:$0xff] }
 0x143   : > { %v663_v47 = vmul.f32 %v645_v26, %v622_v32  ;;  %v624_v50 = vmax.f32 %v616_v59, %v604_v40  ;;  %v669_v51 = vmax.f32 %v621_v28, %v661_v41  ;;  %v664_v53 = vmul.f32 %v649_v30, %v623_v38  ;;  %v689_v41 = vld [vmem:[%s1491_s4 + $0x30] sm:$0xff]  ;;  %v690_v30 = vld [vmem:[%s1491_s4 + $0x38] sm:$0xff] }
 0x144   : > { %v1369_v42 = vmax.f32 %v618_v36, %v610_v39  ;;  %v1375_v48 = vmax.f32 %v611_v10, %v609_v43  ;;  %v670_v31 = vmax.f32 %v622_v32, %v662_v44  ;;  %v625_v54 = vmax.f32 %v617_v49, %v603_v46  ;;  %v894_v43 = vld [vmem:[%s1491_s4 + $0x70] sm:$0xff] }
 0x145   : > { %v677_v27 = vmax.f32 %v669_v51, %v622_v32  ;;  %v671_v56 = vmax.f32 %v623_v38, %v663_v47  ;;  %v665_v58 = vmul.f32 %v653_v52, %v624_v50  ;;  %v672_v1 = vmax.f32 %v624_v50, %v664_v53  ;;  %v688_v32 = vld [vmem:[%s1491_s4 + $0x28] sm:$0xff]  ;;  %v895_v51 = vld [vmem:[%s1491_s4 + $0x78] sm:$0xff] }
 0x146   : > { %v659_v37 = vmul.f32 %v1316_v33, %v1369_v42  ;;  %v660_v55 = vmul.f32 %v1303_v11, %v1375_v48  ;;  %v683_v33 = vld [vmem:[%s1491_s4] sm:$0xff]  ;;  %v678_v11 = vmax.f32 %v670_v31, %v623_v38  ;;  %v666_v14 = vmul.f32 %v657_v60, %v625_v54 }
 0x147   : > { %v673_v7 = vmax.f32 %v625_v54, %v665_v58  ;;  %v693_v0 = vmul.f32 %v685_v57, %v677_v27  ;;  %v735_v12 = vmul.f32 %v890_v45, %v677_v27  ;;  %v679_v13 = vmax.f32 %v671_v56, %v624_v50 }
 0x148   : > { %v667_v62 = vmax.f32 %v1375_v48, %v659_v37  ;;  %v668_v63 = vmax.f32 %v620_v22, %v660_v55  ;;  %v694_v18 = vmul.f32 %v686_v4, %v678_v11  ;;  %v736_v19 = vmul.f32 %v891_v6, %v678_v11 }
 0x149   : > { %v674_v23 = vmax.f32 %v1369_v42, %v666_v14  ;;  %v744_v38 = vsel %vm699_vm7, %v735_v12, 0.0  ;;  %v681_v39 = vmax.f32 %v673_v7, %v1369_v42  ;;  %v695_v40 = vmul.f32 %v687_v20, %v679_v13  ;;  %v767_v20 = vld [vmem:[%s1492_s5] sm:$0x1] }
 0x14a   : > { %v675_v8 = vmax.f32 %v667_v62, %v620_v22  ;;  %v676_v9 = vmax.f32 %v668_v63, %v621_v28  ;;  %v680_v22 = vmax.f32 %v672_v1, %v625_v54  ;;  %v703_v28 = vsel %vm699_vm7, %v693_v0, 0.0 }
 0x14b   : > { %v737_v10 = vmul.f32 %v892_v21, %v679_v13  ;;  %v705_v59 = vsel %vm699_vm7, %v694_v18, 0.0  ;;  %v746_v47 = vsel %vm699_vm7, %v736_v19, 0.0  ;;  %v682_v42 = vmax.f32 %v674_v23, %v1375_v48 }
 0x14c   : > { %v691_v15 = vmul.f32 %v683_v33, %v675_v8  ;;  %v692_v16 = vmul.f32 %v684_v2, %v676_v9  ;;  %v733_v17 = vmul.f32 %v888_v61, %v675_v8  ;;  %v734_v5 = vmul.f32 %v889_v3, %v676_v9 }
 0x14d   : > { %v696_v49 = vmul.f32 %v688_v32, %v680_v22  ;;  %v738_v50 = vmul.f32 %v893_v34, %v680_v22  ;;  %v697_v52 = vmul.f32 %v689_v41, %v681_v39  ;;  %v739_v53 = vmul.f32 %v894_v43, %v681_v39 }
 0x14e   : > { %v700_v24 = vsel %vm699_vm7, %v691_v15, 0.0  ;;  %v741_v25 = vsel %vm699_vm7, %v733_v17, 0.0  ;;  %v742_v26 = vsel %vm699_vm7, %v734_v5, 0.0  ;;  %v701_v29 = vsel %vm699_vm7, %v692_v16, 0.0 }
 0x14f   : > { %v743_v35 = vadd.f32 %v742_v26, %v741_v25  ;;  %v702_v36 = vadd.f32 %v701_v29, %v700_v24  ;;  %v707_v54 = vsel %vm699_vm7, %v695_v40, 0.0  ;;  %v748_v55 = vsel %vm699_vm7, %v737_v10, 0.0 }
 0x150   : > { %v709_v48 = vsel %vm699_vm7, %v696_v49, 0.0  ;;  %v750_v57 = vsel %vm699_vm7, %v738_v50, 0.0  ;;  %v698_v45 = vmul.f32 %v690_v30, %v682_v42  ;;  %v740_v58 = vmul.f32 %v895_v51, %v682_v42 }
 0x151   : > { %v745_v44 = vadd.f32 %v744_v38, %v743_v35  ;;  %v704_v46 = vadd.f32 %v703_v28, %v702_v36  ;;  %v711_v62 = vsel %vm699_vm7, %v697_v52, 0.0  ;;  %v752_v63 = vsel %vm699_vm7, %v739_v53, 0.0 }
 0x152   : > { %v713_v2 = vsel %vm699_vm7, %v698_v45, 0.0  ;;  %v754_v61 = vsel %vm699_vm7, %v740_v58, 0.0 }
 0x153   : > { %v747_v31 = vadd.f32 %v746_v47, %v745_v44  ;;  %v706_v37 = vadd.f32 %v705_v59, %v704_v46 }
 0x155   : > { %v749_v27 = vadd.f32 %v748_v55, %v747_v31  ;;  %v708_v56 = vadd.f32 %v707_v54, %v706_v37 }
 0x157   : > { %v751_v33 = vadd.f32 %v750_v57, %v749_v27  ;;  %v710_v60 = vadd.f32 %v709_v48, %v708_v56 }
 0x159   : > { %v753_v11 = vadd.f32 %v752_v63, %v751_v33  ;;  %v712_v1 = vadd.f32 %v711_v62, %v710_v60 }
 0x15b   : > { %v755_v3 = vadd.f32 %v754_v61, %v753_v11  ;;  %v714_v4 = vadd.f32 %v713_v2, %v712_v1 }
 0x15d   : > { %v756_v6 = vrot.slane %v755_v3, 4  ;;  %v715_v7 = vrot.slane %v714_v4, 4 }
 0x15f   : > { %v757_v8 = vadd.f32 %v756_v6, %v755_v3  ;;  %v716_v9 = vadd.f32 %v715_v7, %v714_v4 }
 0x161   : > { %v758_v0 = vrot.slane %v757_v8, 2  ;;  %v717_v12 = vrot.slane %v716_v9, 2 }
 0x163   : > { %v759_v13 = vadd.f32 %v758_v0, %v757_v8  ;;  %v718_v14 = vadd.f32 %v717_v12, %v716_v9 }
 0x165   : > { %v760_v15 = vrot.slane %v759_v13, 1  ;;  %v719_v16 = vrot.slane %v718_v14, 1 }
 0x167   : > { %v761_v17 = vadd.f32 %v760_v15, %v759_v13  ;;  %v720_v5 = vadd.f32 %v719_v16, %v718_v14 }
 0x169   : > { %v762_v18 = vsel %vm699_vm7, %v761_v17, 0.0  ;;  %v721_v19 = vsel %vm699_vm7, %v720_v5, 0.0 }
 0x16a   : > { %763 = vadd.xlane.f32.xlu1 %v762_v18  ;;  %722 = vadd.xlane.f32.xlu0 %v721_v19 }
 0x1dd   : > { %v764_v21 = vpop.xlane.xlu1 %763  ;;  %v723_v22 = vpop.xlane.xlu0 %722 }
 0x1de   : > { %v766_v23 = vsel %vm765_vm8, %v723_v22, %v764_v21 }
 0x1df   : > { %v768_v24 = vadd.f32 %v767_v20, %v766_v23 }
 0x1e1   : > { %770 = vst.msk [vmem:[%s243_s29] sm:$0x1] %vm769_vm9, %v768_v24 }
 0x1e2   : > { %1059 = shalt.err (!%p1056_p3)
}
 0x1e3   : > { %979 = dma.vmem_to_hbm [thread:$0]  (%p1174_p5), %s783_s9, 16, %s785_s19, %s772_s11  }
 0x1e4 PF: > { %p985_p4 = scmp.ge.s32.totalorder %s1094_s24, 2  ;;  %s796_s15 = sand.u32 1, %s1082_s21  }
 0x1e5   : > { %s797_s17 = scalar_lea.sflag [#allocation3], %s796_s15 }
 0x1e6   : > { %p982_p7 = pnand %p985_p4, %p1178_p6 }
 0x1e8   : > { %p983_p8 = pneg %p982_p7 }
 0x1ea   : > { %1077 = dma.done.wait (%p983_p8), %s797_s17, 16  }
 0x1eb   : > { %1079 = vsyncadd (%p983_p8), %s797_s17, 4294967280  ;;  %p16_p9 = scmp.ge.s32.totalorder %s1161_s27, 4   ;;  %s1496_s21 = smov %s1086_s22 }
 0x1ec   : > { %s1497_s22 = smov %s1090_s23  ;;  %s1498_s23 = smov %s1172_s30 }
 0x1ed   : > { %s1499_s24 = smov %s1161_s27  ;;  %18 = sbr.rel (!%p16_p9) target bundleno = 3 (0x3), region = 80 }
 0x1f2   :  { %802 = vsyncpa [#allocation3], 1 }
 0x1f3   :  { %804 = vsyncpa [#allocation3 + $0x1], 1 }

</bundles_post_ra>
